<compile_context>
chip_gen: v6e
topology: v6e:2x2x1
jax: 0.10.0
libtpu: 0.0.40
codegen_flags: <defaults>
</compile_context>

<pallas_src>
import functools
import math

import jax
import jax.numpy as jnp
from jax.experimental import pallas as pl
from jax.experimental.pallas import tpu as pltpu


def _round_up(x, m):
    return ((x + m - 1) // m) * m


# ~24 MiB of live VMEM per grid step: 2x in + 2x out double buffers in the io
# dtype plus ~3 f32-sized temporaries (x_f32, e_x, pre-cast output).  Keeps
# per-step DMA large (multi-MiB) so the ~0.35us grid-step overhead is hidden,
# while leaving headroom under v7x's 64 MiB physical VMEM.
_TOTAL_VMEM_BUDGET = 24 << 20
# Explicit scoped-VMEM limit: above v5e's 16 MiB default, below v7x's 64 MiB.
_VMEM_LIMIT_BYTES = 48 << 20


def _pick_row_tile(rows, d, itemsize):
    """Rows per block: as large as the VMEM budget allows, but >= ~4 blocks."""
    sub = {1: 32, 2: 16}.get(itemsize, 8)        # sublane packing of io dtype
    if rows <= sub:
        return rows                               # single tiny full block
    bytes_per_row = d * (4 * itemsize + 12)       # io buffers + f32 temporaries
    budget_rows = max(sub, (_TOTAL_VMEM_BUDGET // bytes_per_row) // sub * sub)
    # >= ~4 grid steps when there is enough work: keeps the DMA pipeline
    # overlapped and gives v7x's two TensorCores >= 2 steps each.
    quarter = _round_up((rows + 3) // 4, sub)
    return max(sub, min(budget_rows, quarter))


def _strongermax_kernel(x_ref, o_ref, *, log_strength, subtract_max, seg_size):
    # f32 math throughout: mandatory on v5e (no bf16 VPU/EUP), harmless elsewhere.
    # TODO(synk): on v7x, if a bundle dump shows the EUP slot binding for bf16
    # I/O, compute e_x in bf16 after the f32 max-subtract.
    x = x_ref[...].astype(jnp.float32)
    d = x.shape[-1]
    if seg_size == d:
        # One softmax per row.
        if subtract_max:
            x = x - jnp.max(x, axis=-1, keepdims=True)
        e_x = jnp.exp(x * log_strength)           # strength ** x
        denom = jnp.sum(e_x, axis=-1, keepdims=True)
        o_ref[...] = (e_x * pl.reciprocal(denom, approx=False)).astype(o_ref.dtype)
    else:
        # Folded narrow softmax: each 128-lane row holds d // seg_size
        # independent segments.  Masked per-segment reductions keep the block
        # lane-dense so HBM loads/stores are unmasked full-lane vst.
        fold = d // seg_size
        lane = jax.lax.broadcasted_iota(jnp.int32, x.shape, x.ndim - 1)
        seg_id = lane // seg_size
        if subtract_max:
            m_b = jnp.zeros_like(x)
            for k in range(fold):
                mask = seg_id == k
                m_k = jnp.max(jnp.where(mask, x, -jnp.inf), axis=-1, keepdims=True)
                m_b = jnp.where(mask, m_k, m_b)
            x = x - m_b
        e_x = jnp.exp(x * log_strength)
        d_b = jnp.zeros_like(x)
        for k in range(fold):
            mask = seg_id == k
            d_k = jnp.sum(jnp.where(mask, e_x, 0.0), axis=-1, keepdims=True)
            d_b = jnp.where(mask, d_k, d_b)
        o_ref[...] = (e_x * pl.reciprocal(d_b, approx=False)).astype(o_ref.dtype)


_CORE_PARALLEL_OK = [True]   # flipped off once if the toolchain rejects it


def _run_pallas(x2, row_tile, seg_size, log_strength, subtract_max, core_parallel):
    rows, d = x2.shape
    kernel = functools.partial(
        _strongermax_kernel,
        log_strength=log_strength,
        subtract_max=subtract_max,
        seg_size=seg_size,
    )
    dim_sem = (pltpu.CORE_PARALLEL if core_parallel else "parallel",)
    out = pl.pallas_call(
        kernel,
        out_shape=jax.ShapeDtypeStruct((rows, d), x2.dtype),
        grid_spec=pltpu.PrefetchScalarGridSpec(
            num_scalar_prefetch=0,
            grid=(pl.cdiv(rows, row_tile),),          # edge block masked by Pallas
            # TODO(synk): sweep pipeline_mode=pl.Buffered(3) on the input spec if
            # xprof still shows exposed input DMA at this block size.
            in_specs=[pl.BlockSpec((row_tile, d), lambda i: (i, 0))],
            out_specs=pl.BlockSpec((row_tile, d), lambda i: (i, 0)),
        ),
        compiler_params=pltpu.CompilerParams(
            dimension_semantics=dim_sem,
            vmem_limit_bytes=_VMEM_LIMIT_BYTES,
        ),
    )(x2)
    return jax.block_until_ready(out)


def strongermax(x, strength=2.0, subtract_max=True, dim=-1):
    """Pallas implementation of Strongermax.forward (dim must be the last axis)."""
    assert dim in (-1, x.ndim - 1), "kernel implemented for dim=-1 (last axis)"
    # math.log matches torch.pow only for strength > 0 (the softmax use case).
    assert strength > 0, "strongermax kernel requires strength > 0"

    orig_shape = x.shape
    D = orig_shape[-1]
    rows = int(math.prod(orig_shape[:-1]))
    x2 = x.reshape(rows, D)

    # Fold narrow softmax widths into lane-dense 128-wide rows (free reshape:
    # contiguous dimension merge), so HBM loads/stores are full-lane.
    seg_size, d_kernel = D, D
    if 8 <= D < 128 and 128 % D == 0 and (rows * D) % 128 == 0:
        fold = 128 // D
        x2 = x2.reshape(rows // fold, 128)
        d_kernel = 128

    r_kernel = x2.shape[0]
    row_tile = _pick_row_tile(r_kernel, d_kernel, jnp.dtype(x.dtype).itemsize)
    log_strength = float(math.log(strength))

    args = (x2, row_tile, seg_size, log_strength, bool(subtract_max))
    if _CORE_PARALLEL_OK[0]:
        try:
            out2 = _run_pallas(*args, core_parallel=True)
        except Exception:
            _CORE_PARALLEL_OK[0] = False
            out2 = _run_pallas(*args, core_parallel=False)
    else:
        out2 = _run_pallas(*args, core_parallel=False)

    return out2.reshape(orig_shape)


def strongermax_ref(x, strength=2.0, subtract_max=True):
    """Pure-JAX reference matching the PyTorch forward exactly."""
    xf = x.astype(jnp.float32)
    if subtract_max:
        xf = xf - jnp.max(xf, axis=-1, keepdims=True)
    e_x = jnp.power(strength, xf)
    return (e_x / jnp.sum(e_x, axis=-1, keepdims=True)).astype(x.dtype)


if __name__ == "__main__":
    # Deterministic "config": strongermax_strength = 2.0, softermax_use_xmax = True
    STRENGTH = 2.0
    SUBTRACT_MAX = True

    key = jax.random.PRNGKey(0)
    k0, k1, k2, k3 = jax.random.split(key, 4)

    # attention-score-like input, D=128: plain path, 4 evenly-divided blocks.
    x_main = jax.random.normal(k0, (2, 4, 128, 128), dtype=jnp.float32) * 3.0
    # ragged rows (rows=105, odd so D=64 is unfoldable): exercises the
    # non-divisible grid / edge-block-masked path with no pad or slice.
    x_ragged = jax.random.normal(k1, (3, 5, 7, 64), dtype=jnp.float32) * 3.0
    # bf16 + D=64: folded lane-dense path with 16-row sublane packing.
    x_bf16 = (jax.random.normal(k2, (2, 4, 16, 64), dtype=jnp.float32) * 3.0
              ).astype(jnp.bfloat16)
    # f32 + D=32: folded path whose folded row count (15) hits a partial block.
    x_fold = jax.random.normal(k3, (2, 3, 10, 32), dtype=jnp.float32) * 3.0

    cases = (
        (x_main, 1e-5, 1e-5),
        (x_ragged, 1e-5, 1e-5),
        (x_bf16, 2e-2, 2e-2),
        (x_fold, 1e-5, 1e-5),
    )
    for x, atol, rtol in cases:
        out = jax.block_until_ready(
            strongermax(x, strength=STRENGTH, subtract_max=SUBTRACT_MAX))
        ref = strongermax_ref(x, strength=STRENGTH, subtract_max=SUBTRACT_MAX)
        assert out.shape == x.shape and out.dtype == x.dtype
        assert jnp.allclose(out, ref, atol=atol, rtol=rtol), "mismatch vs reference"

    print("KERNEL_OK")
</pallas_src>

<mosaic_0001>
module attributes {stable_mosaic.version = 11 : i64} {
  func.func @_strongermax_kernel(%arg0: i32, %arg1: memref<256x128xf32, #tpu.memory_space<vmem>>, %arg2: memref<256x128xf32, #tpu.memory_space<vmem>>) attributes {dimension_semantics = [#tpu.dimension_semantics<core_parallel>], iteration_bounds = array<i64: 4>, scalar_prefetch = 0 : i64, scratch_operands = 0 : i64, tpu.core_type = #tpu.core_type<tc>, window_params = [{transform_indices = @transform_0, window_bounds = array<i64: 256, 128>}, {transform_indices = @transform_1, window_bounds = array<i64: 256, 128>}]} {
    %c0 = arith.constant 0 : index
    %c0_0 = arith.constant 0 : index
    %0 = vector.load %arg1[%c0, %c0_0] : memref<256x128xf32, #tpu.memory_space<vmem>>, vector<256x128xf32>
    %cst = arith.constant dense<0xFF800000> : vector<256xf32>
    %1 = vector.multi_reduction <maximumf>, %0, %cst [1] : vector<256x128xf32> to vector<256xf32>
    %2 = vector.shape_cast %1 : vector<256xf32> to vector<256x1xf32>
    %3 = vector.broadcast %2 : vector<256x1xf32> to vector<256x128xf32>
    %4 = arith.subf %0, %3 : vector<256x128xf32>
    %cst_1 = arith.constant 0.693147182 : f32
    %5 = vector.broadcast %cst_1 : f32 to vector<256x128xf32>
    %6 = arith.mulf %4, %5 : vector<256x128xf32>
    %7 = math.exp %6 : vector<256x128xf32>
    %cst_2 = arith.constant dense<0.000000e+00> : vector<256xf32>
    %8 = vector.multi_reduction <add>, %7, %cst_2 [1] : vector<256x128xf32> to vector<256xf32>
    %9 = vector.shape_cast %8 : vector<256xf32> to vector<256x1xf32>
    %10 = tpu.reciprocal %9 : vector<256x1xf32> -> vector<256x1xf32>
    %11 = vector.broadcast %10 : vector<256x1xf32> to vector<256x128xf32>
    %12 = arith.mulf %7, %11 : vector<256x128xf32>
    %c0_3 = arith.constant 0 : index
    %c0_4 = arith.constant 0 : index
    %13 = vector.load %arg2[%c0_3, %c0_4] : memref<256x128xf32, #tpu.memory_space<vmem>>, vector<256x128xf32>
    tpu.vector_store %arg2[%c0_3, %c0_4], %12 {strides = array<i32>} : memref<256x128xf32, #tpu.memory_space<vmem>>, vector<256x128xf32>,
    return
  }
  func.func @transform_0(%arg0: i32) -> (i32, i32) {
    %c0_i32 = arith.constant 0 : i32
    %c0_i32_0 = arith.constant 0 : i32
    return %arg0, %c0_i32 : i32, i32
  }
  func.func @transform_1(%arg0: i32) -> (i32, i32) {
    %c0_i32 = arith.constant 0 : i32
    %c0_i32_0 = arith.constant 0 : i32
    return %arg0, %c0_i32 : i32, i32
  }
}

module attributes {stable_mosaic.version = 11 : i64} {
  func.func @_strongermax_kernel(%arg0: i32, %arg1: memref<256x128xf32, #tpu.memory_space<vmem>>, %arg2: memref<256x128xf32, #tpu.memory_space<vmem>>) attributes {dimension_semantics = [#tpu.dimension_semantics<parallel>], iteration_bounds = array<i64: 4>, scalar_prefetch = 0 : i64, scratch_operands = 0 : i64, tpu.core_type = #tpu.core_type<tc>, window_params = [{transform_indices = @transform_0, window_bounds = array<i64: 256, 128>}, {transform_indices = @transform_1, window_bounds = array<i64: 256, 128>}]} {
    %c0 = arith.constant 0 : index
    %c0_0 = arith.constant 0 : index
    %0 = vector.load %arg1[%c0, %c0_0] : memref<256x128xf32, #tpu.memory_space<vmem>>, vector<256x128xf32>
    %cst = arith.constant dense<0xFF800000> : vector<256xf32>
    %1 = vector.multi_reduction <maximumf>, %0, %cst [1] : vector<256x128xf32> to vector<256xf32>
    %2 = vector.shape_cast %1 : vector<256xf32> to vector<256x1xf32>
    %3 = vector.broadcast %2 : vector<256x1xf32> to vector<256x128xf32>
    %4 = arith.subf %0, %3 : vector<256x128xf32>
    %cst_1 = arith.constant 0.693147182 : f32
    %5 = vector.broadcast %cst_1 : f32 to vector<256x128xf32>
    %6 = arith.mulf %4, %5 : vector<256x128xf32>
    %7 = math.exp %6 : vector<256x128xf32>
    %cst_2 = arith.constant dense<0.000000e+00> : vector<256xf32>
    %8 = vector.multi_reduction <add>, %7, %cst_2 [1] : vector<256x128xf32> to vector<256xf32>
    %9 = vector.shape_cast %8 : vector<256xf32> to vector<256x1xf32>
    %10 = tpu.reciprocal %9 : vector<256x1xf32> -> vector<256x1xf32>
    %11 = vector.broadcast %10 : vector<256x1xf32> to vector<256x128xf32>
    %12 = arith.mulf %7, %11 : vector<256x128xf32>
    %c0_3 = arith.constant 0 : index
    %c0_4 = arith.constant 0 : index
    %13 = vector.load %arg2[%c0_3, %c0_4] : memref<256x128xf32, #tpu.memory_space<vmem>>, vector<256x128xf32>
    tpu.vector_store %arg2[%c0_3, %c0_4], %12 {strides = array<i32>} : memref<256x128xf32, #tpu.memory_space<vmem>>, vector<256x128xf32>,
    return
  }
  func.func @transform_0(%arg0: i32) -> (i32, i32) {
    %c0_i32 = arith.constant 0 : i32
    %c0_i32_0 = arith.constant 0 : i32
    return %arg0, %c0_i32 : i32, i32
  }
  func.func @transform_1(%arg0: i32) -> (i32, i32) {
    %c0_i32 = arith.constant 0 : i32
    %c0_i32_0 = arith.constant 0 : i32
    return %arg0, %c0_i32 : i32, i32
  }
}

</mosaic_0001>

<bundles_post_ra>
// kernel: tpu_custom_call.1
= control target key start
LH: loop header
LB: loop body
LE: loop exit
PB: predicated region body
PF: predicated region fallthrough
CT: control target
= control target key end

     0   :  { %6 = vsyncpa [#allocation3], 0  ;;  %s1393_s0 = inlined_call_operand.hbm [shape: f32[1024,128], index: 0, kind: input, shape index: {}]   ;;  %s1394_s1 = inlined_call_operand.hbm [shape: f32[1024,128], index: 1, kind: output, shape index: {}]  }
   0x1   :  { %8 = vsyncpa [#allocation3 + $0x1], 0 }
   0x2   :  { %9 = vsyncpa [#allocation4], 0 }
   0x3   :  { %11 = vsyncpa [#allocation4 + $0x1], 0  ;;  %s912_s6 = smov 0   ;;  %s914_s7 = smov 0  }
   0x4   :  { %s916_s8 = smov 0   ;;  %s918_s9 = smov 0  }
   0x5 LB: > { %s933_s10 = sadd.s32 4294967295, %s894_s9   ;;  %s608_s11 = sadd.s32 4294967294, %s894_s9   ;;  %s894_s9 = sphi %s918_s9, %s1408_s9   ;;  %s890_s8 = sphi %s916_s8, %s1407_s8   ;;  %s886_s7 = sphi %s914_s7, %s1406_s7   ;;  %s882_s6 = sphi %s912_s6, %s1405_s6  }
   0x6   : > { %s937_s12 = sadd.s32 1, %s894_s9   ;;  %s24_s13 = sadd.s32 1, %s890_s8 }
   0x7   : > { %s21_s14 = ssub.s32 %s894_s9, %s937_s12  ;;  %p31_p0 = scmp.ne.s32.totalorder %s890_s8, %s886_s7 }
   0x8   : > { %p22_p1 = scmp.eq.s32.totalorder %s21_s14, 0  ;;  %p32_p2 = scmp.eq.s32.totalorder %s894_s9, 0 }
   0x9   : > { %p37_p3 = scmp.ne.s32.totalorder %s886_s7, %s882_s6  ;;  %p38_p4 = scmp.eq.s32.totalorder %s933_s10, 0 }
   0xa   : > { %s949_s15 = scalar_select %p22_p1, %s890_s8, %s24_s13  }
   0xb   : > { %p951_p5 = por %p32_p2, %p31_p0  ;;  %p955_p6 = por %p38_p4, %p37_p3 }
   0xc   : > { %p61_p7 = scmp.eq.s32.totalorder %s933_s10, 3  ;;  %p67_p8 = scmp.eq.s32.totalorder %s608_s11, 3 }
   0xd   : > { %s1398_s17 = scalar_select %p955_p6, 1, 0 }
   0xe   : > { %p636_p9 = scmp.lt.s32.totalorder %s894_s9, 4  ;;  %p961_p10 = por %p61_p7, %p31_p0 }
   0xf   : > { %p965_p11 = por %p67_p8, %p37_p3  ;;  %s87_s20 = sand.u32 1, %s890_s8  }
  0x10   : > { %s1399_s18 = scalar_select %p961_p10, 1, 0 }
  0x11   : > { %s1400_s19 = scalar_select %p965_p11, 1, 0 }
  0x12   : > { %s622_s21 = sshll.u32 %s894_s9, 12  ;;  %s611_s22 = sshll.u32 %s87_s20, 8 }
  0x13   : > { %s974_s25 = scalar_lea.hbm %s1393_s0, %s622_s21  ;;  %s91_s26 = scalar_lea.vmem [#allocation2], %s611_s22 }
  0x14   : > { %s98_s27 = sshll.u32 %s91_s26, 4  ;;  %p978_p12 = pnand %p636_p9, %p951_p5  ;;  %s982_s27 = int_to_ptr.vmem [resolvable:$true] %s98_s27 }
  0x15   : > { %s984_s29 = scalar_lea.sflag [#allocation3], %s87_s20  ;;  %s802_s30 = scalar_lea.hbm %s974_s25, 4096 }
  0x16   : > { %p803_p13 = scmp.ne.s32.totalorder %s974_s25, %s802_s30  ;;  %p804_p0 = pneg %p978_p12 }
  0x17   : > { %s807_s4 = scalar_lea.hbm %s1393_s0, 16384  ;;  %p808_p3 = scmp.lt.s32.totalorder %s974_s25, %s1393_s0 }
  0x18   : > { %p805_p1 = pnand %p804_p0, %p803_p13  ;;  %p809_p4 = scmp.lt.s32.totalorder %s807_s4, %s802_s30 }
  0x1a   : > { %p806_p2 = pneg %p805_p1  ;;  %p810_p5 = por %p809_p4, %p808_p3 }
  0x1c   : > { %p811_p7 = pnand %p810_p5, %p806_p2 }
  0x1e   : > { %814 = shalt.err (!%p811_p7)
}
  0x1f   : > { %s815_s13 = scalar_lea.vmem %s982_s27, 4096  ;;  %s896_s14 = smov [#allocation2]  }
  0x20   : > { %p816_p8 = scmp.ne.s32.totalorder %s982_s27, %s815_s13  ;;  %s820_s16 = sshll.u32 %s896_s14, 4  ;;  %s821_s16 = int_to_ptr.vmem [resolvable:$false] %s820_s16 }
  0x21   : > { %s822_s20 = scalar_lea.vmem %s821_s16, 8192  ;;  %p823_p1 = scmp.lt.s32.totalorder %s982_s27, %s821_s16 }
  0x22   : > { %p818_p9 = pnand %p816_p8, %p804_p0  ;;  %p824_p11 = scmp.lt.s32.totalorder %s822_s20, %s815_s13 }
  0x24   : > { %p819_p13 = pneg %p818_p9  ;;  %p825_p10 = por %p824_p11, %p823_p1 }
  0x26   : > { %p826_p6 = pnand %p825_p10, %p819_p13 }
  0x28   : > { %829 = shalt.err (!%p826_p6)
}
  0x29   : > { %s897_s21 = smov 128   ;;  %s898_s22 = smov 8  }
  0x2a   : > { %631 = dma.hbm_to_vmem [thread:$0]  (!%p978_p12), %s974_s25, 4096, %s982_s27, %s984_s29, %s897_s21, %s897_s21, %s898_s22  }
  0x2b   : > { %p614_p0 = scmp.ge.s32.totalorder %s894_s9, 1  ;;  %p106_p2 = scmp.lt.s32.totalorder %s894_s9, 5 }
  0x2d   : > { %p107_p3 = pnand %p614_p0, %p106_p2 }
  0x2e   : > { %s1008_s23 = sand.u32 (!%p107_p3), 1, %s886_s7   ;;  %p1402_p6 = scmp.ne.s32.totalorder (!%p107_p3), %s1398_s17, 0 }
  0x2f   : > { %110 = sbr.rel (%p107_p3) target bundleno = 444 (0x1bc), region = 24  ;;  %s615_s24 = sshll.u32 (!%p107_p3), %s1008_s23, 8 }
  0x30   : > { %s113_s26 = scalar_lea.sflag (!%p107_p3), [#allocation3], %s1008_s23  ;;  %s1014_s30 = scalar_lea.vmem (!%p107_p3), [#allocation2], %s615_s24 }
  0x34   : > { %873 = dma.done.wait (%p1402_p6), %s113_s26, 4096  }
  0x35   : > { %875 = vsyncadd (%p1402_p6), %s113_s26, 4294963200  ;;  %v1021_v0 = vld [vmem:[%s1014_s30] sm:$0xff]  ;;  %v1024_v1 = vld [vmem:[%s1014_s30 + $0x10] sm:$0xff]  ;;  %s1279_s17 = scalar_lea.vmem [#allocation5], %s615_s24  ;;  %s623_s25 = sshll.u32 %s933_s10, 12 }
  0x36   : > { %169 = vmax.xlane.f32.xlu0 %v1021_v0  ;;  %173 = vmax.xlane.f32.xlu1 %v1024_v1  ;;  %v1029_v2 = vld [vmem:[%s1014_s30 + $0x8] sm:$0xff]  ;;  %v1032_v3 = vld [vmem:[%s1014_s30 + $0x18] sm:$0xff]  ;;  %v1037_v4 = vld [vmem:[%s1014_s30 + $0x20] sm:$0xff]  ;;  %s535_s27 = sshll.u32 %s1279_s17, 4  ;;  %s1347_s2 = scalar_lea.hbm %s1394_s1, %s623_s25  ;;  %s1349_s27 = int_to_ptr.vmem [resolvable:$true] %s535_s27 }
  0x37   : > { %v1040_v5 = vld [vmem:[%s1014_s30 + $0x28] sm:$0xff]  ;;  %v1045_v6 = vld [vmem:[%s1014_s30 + $0x30] sm:$0xff]  ;;  %v1048_v7 = vld [vmem:[%s1014_s30 + $0x38] sm:$0xff]  ;;  %s522_s10 = scalar_lea.sflag [#allocation4], %s1008_s23  ;;  %s830_s3 = scalar_lea.vmem %s1349_s27, 4096 }
  0x38   : > { %v1053_v8 = vld [vmem:[%s1014_s30 + $0x40] sm:$0xff]  ;;  %v1056_v9 = vld [vmem:[%s1014_s30 + $0x48] sm:$0xff]  ;;  %v1061_v10 = vld [vmem:[%s1014_s30 + $0x50] sm:$0xff]  ;;  %p831_p10 = scmp.ne.s32.totalorder %s1349_s27, %s830_s3  ;;  %p1403_p11 = scmp.ne.s32.totalorder %s1399_s18, 0 }
  0x39   : > { %v1064_v11 = vld [vmem:[%s1014_s30 + $0x58] sm:$0xff]  ;;  %v1069_v12 = vld [vmem:[%s1014_s30 + $0x60] sm:$0xff]  ;;  %v1072_v13 = vld [vmem:[%s1014_s30 + $0x68] sm:$0xff]  ;;  %s899_s4 = smov [#allocation5]  }
  0x3a   : > { %171 = vmax.xlane.f32.xlu0 %v1029_v2  ;;  %175 = vmax.xlane.f32.xlu1 %v1032_v3  ;;  %v1077_v14 = vld [vmem:[%s1014_s30 + $0x70] sm:$0xff]  ;;  %v1080_v15 = vld [vmem:[%s1014_s30 + $0x78] sm:$0xff]  ;;  %v1085_v16 = vld [vmem:[%s1014_s30 + $0x80] sm:$0xff]  ;;  %p832_p12 = pnand %p831_p10, %p1403_p11  ;;  %s834_s5 = sshll.u32 %s899_s4, 4  ;;  %s835_s5 = int_to_ptr.vmem [resolvable:$false] %s834_s5 }
  0x3b   : > { %v1088_v17 = vld [vmem:[%s1014_s30 + $0x88] sm:$0xff]  ;;  %v1093_v18 = vld [vmem:[%s1014_s30 + $0x90] sm:$0xff]  ;;  %v1096_v19 = vld [vmem:[%s1014_s30 + $0x98] sm:$0xff]  ;;  %s836_s11 = scalar_lea.vmem %s835_s5, 8192  ;;  %p837_p5 = scmp.lt.s32.totalorder %s1349_s27, %s835_s5 }
  0x3c   : > { %v1101_v20 = vld [vmem:[%s1014_s30 + $0xa0] sm:$0xff]  ;;  %v1104_v21 = vld [vmem:[%s1014_s30 + $0xa8] sm:$0xff]  ;;  %v1109_v22 = vld [vmem:[%s1014_s30 + $0xb0] sm:$0xff]  ;;  %p833_p4 = pneg %p832_p12  ;;  %p838_p7 = scmp.lt.s32.totalorder %s836_s11, %s830_s3 }
  0x3d   : > { %v1112_v23 = vld [vmem:[%s1014_s30 + $0xb8] sm:$0xff]  ;;  %v1117_v24 = vld [vmem:[%s1014_s30 + $0xc0] sm:$0xff]  ;;  %v1120_v25 = vld [vmem:[%s1014_s30 + $0xc8] sm:$0xff] }
  0x3e   : > { %177 = vmax.xlane.f32.xlu0 %v1037_v4  ;;  %179 = vmax.xlane.f32.xlu1 %v1040_v5  ;;  %v1125_v26 = vld [vmem:[%s1014_s30 + $0xd0] sm:$0xff]  ;;  %v1128_v27 = vld [vmem:[%s1014_s30 + $0xd8] sm:$0xff]  ;;  %v1133_v28 = vld [vmem:[%s1014_s30 + $0xe0] sm:$0xff]  ;;  %p839_p8 = por %p838_p7, %p837_p5 }
  0x3f   : > { %v1136_v29 = vld [vmem:[%s1014_s30 + $0xe8] sm:$0xff]  ;;  %v1141_v30 = vld [vmem:[%s1014_s30 + $0xf0] sm:$0xff]  ;;  %v1144_v31 = vld [vmem:[%s1014_s30 + $0xf8] sm:$0xff] }
  0x40   : > { %p840_p9 = pnand %p839_p8, %p833_p4 }
  0x42   : > { %181 = vmax.xlane.f32.xlu0 %v1045_v6  ;;  %183 = vmax.xlane.f32.xlu1 %v1048_v7 }
  0x46   : > { %185 = vmax.xlane.f32.xlu0 %v1053_v8  ;;  %187 = vmax.xlane.f32.xlu1 %v1056_v9 }
  0x4a   : > { %189 = vmax.xlane.f32.xlu0 %v1061_v10  ;;  %191 = vmax.xlane.f32.xlu1 %v1064_v11 }
  0x4e   : > { %193 = vmax.xlane.f32.xlu0 %v1069_v12  ;;  %195 = vmax.xlane.f32.xlu1 %v1072_v13 }
  0x52   : > { %197 = vmax.xlane.f32.xlu0 %v1077_v14  ;;  %199 = vmax.xlane.f32.xlu1 %v1080_v15 }
  0x56   : > { %201 = vmax.xlane.f32.xlu0 %v1085_v16  ;;  %203 = vmax.xlane.f32.xlu1 %v1088_v17 }
  0x5a   : > { %205 = vmax.xlane.f32.xlu0 %v1093_v18  ;;  %207 = vmax.xlane.f32.xlu1 %v1096_v19 }
  0x5e   : > { %209 = vmax.xlane.f32.xlu0 %v1101_v20  ;;  %211 = vmax.xlane.f32.xlu1 %v1104_v21 }
  0x62   : > { %213 = vmax.xlane.f32.xlu0 %v1109_v22  ;;  %215 = vmax.xlane.f32.xlu1 %v1112_v23 }
  0x66   : > { %217 = vmax.xlane.f32.xlu0 %v1117_v24  ;;  %219 = vmax.xlane.f32.xlu1 %v1120_v25 }
  0x6a   : > { %221 = vmax.xlane.f32.xlu0 %v1125_v26  ;;  %223 = vmax.xlane.f32.xlu1 %v1128_v27 }
  0x6e   : > { %225 = vmax.xlane.f32.xlu0 %v1133_v28  ;;  %227 = vmax.xlane.f32.xlu1 %v1136_v29 }
  0x72   : > { %229 = vmax.xlane.f32.xlu0 %v1141_v30  ;;  %231 = vmax.xlane.f32.xlu1 %v1144_v31 }
  0xbf   : > { %v170_v32 = vpop.xlane.xlu0 %169  ;;  %v174_v33 = vpop.xlane.xlu1 %173 }
  0xc0   : > { %v233_v34 = vsub.f32 %v1021_v0, %v170_v32  ;;  %v235_v35 = vsub.f32 %v1024_v1, %v174_v33 }
  0xc2   : > { %v265_v36 = vmul.f32 0.6931472, %v233_v34  ;;  %v267_v37 = vmul.f32 0.6931472, %v235_v35 }
  0xc3   : > { %v172_v38 = vpop.xlane.xlu0 %171  ;;  %v176_v39 = vpop.xlane.xlu1 %175 }
  0xc4   : > { %v297_v40 = vmul.f32 1.442695, %v265_v36  ;;  %v301_v41 = vmul.f32 1.442695, %v267_v37  ;;  %v234_v42 = vsub.f32 %v1029_v2, %v172_v38  ;;  %v236_v43 = vsub.f32 %v1032_v3, %v176_v39 }
  0xc6   : > { %674 = vpow2.f32 %v297_v40  ;;  %v266_v44 = vmul.f32 0.6931472, %v234_v42  ;;  %v268_v45 = vmul.f32 0.6931472, %v236_v43 }
  0xc7   : > { %676 = vpow2.f32 %v301_v41  ;;  %v178_v46 = vpop.xlane.xlu0 %177  ;;  %v180_v47 = vpop.xlane.xlu1 %179 }
  0xc8   : > { %v299_v48 = vmul.f32 1.442695, %v266_v44  ;;  %v303_v49 = vmul.f32 1.442695, %v268_v45  ;;  %v237_v50 = vsub.f32 %v1037_v4, %v178_v46  ;;  %v238_v51 = vsub.f32 %v1040_v5, %v180_v47 }
  0xca   : > { %678 = vpow2.f32 %v299_v48  ;;  %v269_v52 = vmul.f32 0.6931472, %v237_v50  ;;  %v270_v53 = vmul.f32 0.6931472, %v238_v51 }
  0xcb   : > { %680 = vpow2.f32 %v303_v49  ;;  %v182_v54 = vpop.xlane.xlu0 %181  ;;  %v184_v55 = vpop.xlane.xlu1 %183 }
  0xcc   : > { %v305_v56 = vmul.f32 1.442695, %v269_v52  ;;  %v307_v57 = vmul.f32 1.442695, %v270_v53  ;;  %v239_v58 = vsub.f32 %v1045_v6, %v182_v54  ;;  %v240_v59 = vsub.f32 %v1048_v7, %v184_v55 }
  0xce   : > { %682 = vpow2.f32 %v305_v56  ;;  %v271_v60 = vmul.f32 0.6931472, %v239_v58  ;;  %v272_v61 = vmul.f32 0.6931472, %v240_v59 }
  0xcf   : > { %684 = vpow2.f32 %v307_v57  ;;  %v186_v62 = vpop.xlane.xlu0 %185  ;;  %v188_v63 = vpop.xlane.xlu1 %187 }
  0xd0   : > { %v309_v0 = vmul.f32 1.442695, %v271_v60  ;;  %v311_v1 = vmul.f32 1.442695, %v272_v61  ;;  %v241_v2 = vsub.f32 %v1053_v8, %v186_v62  ;;  %v242_v3 = vsub.f32 %v1056_v9, %v188_v63 }
  0xd2   : > { %686 = vpow2.f32 %v309_v0  ;;  %v273_v4 = vmul.f32 0.6931472, %v241_v2  ;;  %v274_v5 = vmul.f32 0.6931472, %v242_v3 }
  0xd3   : > { %v1158_v32 = vpop.eup %674  ;;  %688 = vpow2.f32 %v311_v1  ;;  %v190_v6 = vpop.xlane.xlu0 %189 }
  0xd4   : > { %v192_v7 = vpop.xlane.xlu1 %191  ;;  %v1160_v33 = vpop.eup %676  ;;  %v313_v34 = vmul.f32 1.442695, %v273_v4  ;;  %v315_v35 = vmul.f32 1.442695, %v274_v5  ;;  %v243_v36 = vsub.f32 %v1061_v10, %v190_v6  ;;  %361 = vadd.xlane.f32.xlu0 %v1158_v32 }
  0xd5   : > { %v244_v8 = vsub.f32 %v1064_v11, %v192_v7 }
  0xd6   : > { %690 = vpow2.f32 %v313_v34  ;;  %v275_v9 = vmul.f32 0.6931472, %v243_v36 }
  0xd7   : > { %v276_v37 = vmul.f32 0.6931472, %v244_v8  ;;  %v1165_v38 = vpop.eup %678  ;;  %692 = vpow2.f32 %v315_v35  ;;  %v194_v39 = vpop.xlane.xlu0 %193 }
  0xd8   : > { %v196_v40 = vpop.xlane.xlu1 %195  ;;  %v1167_v41 = vpop.eup %680  ;;  %v317_v42 = vmul.f32 1.442695, %v275_v9  ;;  %v245_v44 = vsub.f32 %v1069_v12, %v194_v39  ;;  %365 = vadd.xlane.f32.xlu0 %v1160_v33  ;;  %363 = vadd.xlane.f32.xlu1 %v1165_v38 }
  0xd9   : > { %v319_v43 = vmul.f32 1.442695, %v276_v37  ;;  %v246_v10 = vsub.f32 %v1072_v13, %v196_v40 }
  0xda   : > { %694 = vpow2.f32 %v317_v42  ;;  %v277_v11 = vmul.f32 0.6931472, %v245_v44 }
  0xdb   : > { %v278_v45 = vmul.f32 0.6931472, %v246_v10  ;;  %v1173_v46 = vpop.eup %682  ;;  %696 = vpow2.f32 %v319_v43  ;;  %v198_v47 = vpop.xlane.xlu0 %197 }
  0xdc   : > { %v200_v48 = vpop.xlane.xlu1 %199  ;;  %v1175_v49 = vpop.eup %684  ;;  %v321_v50 = vmul.f32 1.442695, %v277_v11  ;;  %v247_v12 = vsub.f32 %v1077_v14, %v198_v47  ;;  %367 = vadd.xlane.f32.xlu1 %v1167_v41  ;;  %369 = vadd.xlane.f32.xlu0 %v1173_v46 }
  0xdd   : > { %v323_v51 = vmul.f32 1.442695, %v278_v45  ;;  %v248_v13 = vsub.f32 %v1080_v15, %v200_v48 }
  0xde   : > { %698 = vpow2.f32 %v321_v50  ;;  %v279_v52 = vmul.f32 0.6931472, %v247_v12 }
  0xdf   : > { %v280_v53 = vmul.f32 0.6931472, %v248_v13  ;;  %v1181_v54 = vpop.eup %686  ;;  %700 = vpow2.f32 %v323_v51  ;;  %v202_v55 = vpop.xlane.xlu0 %201 }
  0xe0   : > { %v204_v56 = vpop.xlane.xlu1 %203  ;;  %v1183_v57 = vpop.eup %688  ;;  %v325_v58 = vmul.f32 1.442695, %v279_v52  ;;  %v249_v14 = vsub.f32 %v1085_v16, %v202_v55  ;;  %371 = vadd.xlane.f32.xlu1 %v1175_v49  ;;  %373 = vadd.xlane.f32.xlu0 %v1181_v54 }
  0xe1   : > { %v327_v59 = vmul.f32 1.442695, %v280_v53  ;;  %v250_v15 = vsub.f32 %v1088_v17, %v204_v56 }
  0xe2   : > { %702 = vpow2.f32 %v325_v58  ;;  %v281_v60 = vmul.f32 0.6931472, %v249_v14 }
  0xe3   : > { %v282_v61 = vmul.f32 0.6931472, %v250_v15  ;;  %v1189_v62 = vpop.eup %690  ;;  %704 = vpow2.f32 %v327_v59  ;;  %v206_v63 = vpop.xlane.xlu0 %205 }
  0xe4   : > { %v208_v0 = vpop.xlane.xlu1 %207  ;;  %v1191_v1 = vpop.eup %692  ;;  %v329_v2 = vmul.f32 1.442695, %v281_v60  ;;  %v251_v16 = vsub.f32 %v1093_v18, %v206_v63  ;;  %375 = vadd.xlane.f32.xlu1 %v1183_v57  ;;  %377 = vadd.xlane.f32.xlu0 %v1189_v62 }
  0xe5   : > { %v331_v3 = vmul.f32 1.442695, %v282_v61  ;;  %v252_v17 = vsub.f32 %v1096_v19, %v208_v0 }
  0xe6   : > { %706 = vpow2.f32 %v329_v2  ;;  %v283_v4 = vmul.f32 0.6931472, %v251_v16 }
  0xe7   : > { %v284_v5 = vmul.f32 0.6931472, %v252_v17  ;;  %v1197_v6 = vpop.eup %694  ;;  %708 = vpow2.f32 %v331_v3  ;;  %v210_v7 = vpop.xlane.xlu0 %209 }
  0xe8   : > { %v212_v34 = vpop.xlane.xlu1 %211  ;;  %v1199_v35 = vpop.eup %696  ;;  %v333_v36 = vmul.f32 1.442695, %v283_v4  ;;  %v253_v18 = vsub.f32 %v1101_v20, %v210_v7  ;;  %379 = vadd.xlane.f32.xlu1 %v1191_v1  ;;  %381 = vadd.xlane.f32.xlu0 %v1197_v6 }
  0xe9   : > { %v335_v8 = vmul.f32 1.442695, %v284_v5  ;;  %v254_v19 = vsub.f32 %v1104_v21, %v212_v34 }
  0xea   : > { %710 = vpow2.f32 %v333_v36  ;;  %v285_v9 = vmul.f32 0.6931472, %v253_v18 }
  0xeb   : > { %v286_v37 = vmul.f32 0.6931472, %v254_v19  ;;  %v1205_v39 = vpop.eup %698  ;;  %712 = vpow2.f32 %v335_v8  ;;  %v214_v40 = vpop.xlane.xlu0 %213 }
  0xec   : > { %v216_v42 = vpop.xlane.xlu1 %215  ;;  %v1207_v43 = vpop.eup %700  ;;  %v337_v44 = vmul.f32 1.442695, %v285_v9  ;;  %v255_v20 = vsub.f32 %v1109_v22, %v214_v40  ;;  %383 = vadd.xlane.f32.xlu1 %v1199_v35  ;;  %385 = vadd.xlane.f32.xlu0 %v1205_v39 }
  0xed   : > { %v339_v10 = vmul.f32 1.442695, %v286_v37  ;;  %v256_v21 = vsub.f32 %v1112_v23, %v216_v42 }
  0xee   : > { %714 = vpow2.f32 %v337_v44  ;;  %v287_v11 = vmul.f32 0.6931472, %v255_v20 }
  0xef   : > { %v288_v45 = vmul.f32 0.6931472, %v256_v21  ;;  %v1213_v47 = vpop.eup %702  ;;  %716 = vpow2.f32 %v339_v10  ;;  %v218_v48 = vpop.xlane.xlu0 %217 }
  0xf0   : > { %v220_v50 = vpop.xlane.xlu1 %219  ;;  %v1215_v51 = vpop.eup %704  ;;  %v341_v12 = vmul.f32 1.442695, %v287_v11  ;;  %v257_v22 = vsub.f32 %v1117_v24, %v218_v48  ;;  %387 = vadd.xlane.f32.xlu1 %v1207_v43  ;;  %389 = vadd.xlane.f32.xlu0 %v1213_v47 }
  0xf1   : > { %v343_v13 = vmul.f32 1.442695, %v288_v45  ;;  %v258_v23 = vsub.f32 %v1120_v25, %v220_v50 }
  0xf2   : > { %718 = vpow2.f32 %v341_v12  ;;  %v289_v52 = vmul.f32 0.6931472, %v257_v22 }
  0xf3   : > { %v290_v53 = vmul.f32 0.6931472, %v258_v23  ;;  %v1221_v55 = vpop.eup %706  ;;  %720 = vpow2.f32 %v343_v13  ;;  %v222_v56 = vpop.xlane.xlu0 %221 }
  0xf4   : > { %v224_v58 = vpop.xlane.xlu1 %223  ;;  %v1223_v59 = vpop.eup %708  ;;  %v345_v14 = vmul.f32 1.442695, %v289_v52  ;;  %v259_v24 = vsub.f32 %v1125_v26, %v222_v56  ;;  %391 = vadd.xlane.f32.xlu1 %v1215_v51  ;;  %393 = vadd.xlane.f32.xlu0 %v1221_v55 }
  0xf5   : > { %v347_v15 = vmul.f32 1.442695, %v290_v53  ;;  %v260_v25 = vsub.f32 %v1128_v27, %v224_v58 }
  0xf6   : > { %722 = vpow2.f32 %v345_v14  ;;  %v291_v60 = vmul.f32 0.6931472, %v259_v24 }
  0xf7   : > { %v292_v61 = vmul.f32 0.6931472, %v260_v25  ;;  %v1229_v63 = vpop.eup %710  ;;  %724 = vpow2.f32 %v347_v15  ;;  %v226_v0 = vpop.xlane.xlu0 %225 }
  0xf8   : > { %v228_v2 = vpop.xlane.xlu1 %227  ;;  %v1231_v3 = vpop.eup %712  ;;  %v349_v16 = vmul.f32 1.442695, %v291_v60  ;;  %v261_v26 = vsub.f32 %v1133_v28, %v226_v0  ;;  %395 = vadd.xlane.f32.xlu1 %v1223_v59  ;;  %397 = vadd.xlane.f32.xlu0 %v1229_v63 }
  0xf9   : > { %v351_v17 = vmul.f32 1.442695, %v292_v61  ;;  %v262_v27 = vsub.f32 %v1136_v29, %v228_v2 }
  0xfa   : > { %726 = vpow2.f32 %v349_v16  ;;  %v293_v4 = vmul.f32 0.6931472, %v261_v26 }
  0xfb   : > { %v294_v5 = vmul.f32 0.6931472, %v262_v27  ;;  %v1237_v7 = vpop.eup %714  ;;  %728 = vpow2.f32 %v351_v17  ;;  %v230_v34 = vpop.xlane.xlu0 %229 }
  0xfc   : > { %v232_v36 = vpop.xlane.xlu1 %231  ;;  %v1239_v8 = vpop.eup %716  ;;  %v353_v18 = vmul.f32 1.442695, %v293_v4  ;;  %v263_v28 = vsub.f32 %v1141_v30, %v230_v34  ;;  %399 = vadd.xlane.f32.xlu1 %v1231_v3  ;;  %401 = vadd.xlane.f32.xlu0 %v1237_v7 }
  0xfd   : > { %v355_v19 = vmul.f32 1.442695, %v294_v5  ;;  %v264_v29 = vsub.f32 %v1144_v31, %v232_v36 }
  0xfe   : > { %730 = vpow2.f32 %v353_v18  ;;  %v295_v9 = vmul.f32 0.6931472, %v263_v28 }
  0xff   : > { %v296_v37 = vmul.f32 0.6931472, %v264_v29  ;;  %v1245_v40 = vpop.eup %718  ;;  %732 = vpow2.f32 %v355_v19 }
 0x100   : > { %v1247_v42 = vpop.eup %720  ;;  %v357_v44 = vmul.f32 1.442695, %v295_v9  ;;  %403 = vadd.xlane.f32.xlu1 %v1239_v8  ;;  %405 = vadd.xlane.f32.xlu0 %v1245_v40 }
 0x101   : > { %v359_v10 = vmul.f32 1.442695, %v296_v37 }
 0x102   : > { %734 = vpow2.f32 %v357_v44 }
 0x103   : > { %v1251_v30 = vpop.eup %722  ;;  %736 = vpow2.f32 %v359_v10 }
 0x104   : > { %v1253_v20 = vpop.eup %724  ;;  %407 = vadd.xlane.f32.xlu1 %v1247_v42  ;;  %409 = vadd.xlane.f32.xlu0 %v1251_v30 }
 0x107   : > { %v1257_v31 = vpop.eup %726 }
 0x108   : > { %v1259_v21 = vpop.eup %728  ;;  %411 = vadd.xlane.f32.xlu1 %v1253_v20  ;;  %413 = vadd.xlane.f32.xlu0 %v1257_v31 }
 0x10b   : > { %v1263_v11 = vpop.eup %730 }
 0x10c   : > { %415 = vadd.xlane.f32.xlu1 %v1259_v21  ;;  %417 = vadd.xlane.f32.xlu0 %v1263_v11  ;;  %v1267_v45 = vpop.eup %732 }
 0x10f   : > { %v1269_v48 = vpop.eup %734 }
 0x110   : > { %419 = vadd.xlane.f32.xlu1 %v1267_v45  ;;  %421 = vadd.xlane.f32.xlu0 %v1269_v48  ;;  %v1273_v50 = vpop.eup %736 }
 0x114   : > { %423 = vadd.xlane.f32.xlu1 %v1273_v50 }
 0x15d   : > { %v362_v12 = vpop.xlane.xlu0 %361 }
 0x15e   : > { %738 = vrcp.f32 %v362_v12 }
 0x161   : > { %v364_v13 = vpop.xlane.xlu1 %363  ;;  %v366_v22 = vpop.xlane.xlu0 %365 }
 0x162   : > { %740 = vrcp.f32 %v364_v13 }
 0x163   : > { %742 = vrcp.f32 %v366_v22 }
 0x165   : > { %v368_v23 = vpop.xlane.xlu1 %367  ;;  %v370_v52 = vpop.xlane.xlu0 %369 }
 0x166   : > { %744 = vrcp.f32 %v368_v23 }
 0x167   : > { %746 = vrcp.f32 %v370_v52 }
 0x169   : > { %v372_v53 = vpop.xlane.xlu1 %371  ;;  %v374_v56 = vpop.xlane.xlu0 %373 }
 0x16a   : > { %748 = vrcp.f32 %v372_v53 }
 0x16b   : > { %v739_v58 = vpop.eup %738  ;;  %750 = vrcp.f32 %v374_v56 }
 0x16c   : > { %v457_v14 = vmul.f32 %v739_v58, %v1158_v32 }
 0x16d   : > { %v376_v15 = vpop.xlane.xlu1 %375  ;;  %v378_v24 = vpop.xlane.xlu0 %377 }
 0x16e   : > { %489 = vst [vmem:[%s1279_s17] sm:$0xff] %v457_v14  ;;  %752 = vrcp.f32 %v376_v15 }
 0x16f   : > { %v741_v25 = vpop.eup %740  ;;  %754 = vrcp.f32 %v378_v24 }
 0x170   : > { %v743_v60 = vpop.eup %742  ;;  %v458_v61 = vmul.f32 %v741_v25, %v1165_v38 }
 0x171   : > { %v459_v0 = vmul.f32 %v743_v60, %v1160_v33  ;;  %v380_v32 = vpop.xlane.xlu1 %379  ;;  %v382_v2 = vpop.xlane.xlu0 %381 }
 0x172   : > { %490 = vst [vmem:[%s1279_s17 + $0x8] sm:$0xff] %v458_v61  ;;  %756 = vrcp.f32 %v380_v32 }
 0x173   : > { %v745_v16 = vpop.eup %744  ;;  %491 = vst [vmem:[%s1279_s17 + $0x10] sm:$0xff] %v459_v0  ;;  %758 = vrcp.f32 %v382_v2 }
 0x174   : > { %v747_v17 = vpop.eup %746  ;;  %v460_v26 = vmul.f32 %v745_v16, %v1167_v41 }
 0x175   : > { %v461_v27 = vmul.f32 %v747_v17, %v1173_v46  ;;  %v384_v4 = vpop.xlane.xlu1 %383  ;;  %v386_v5 = vpop.xlane.xlu0 %385 }
 0x176   : > { %492 = vst [vmem:[%s1279_s17 + $0x18] sm:$0xff] %v460_v26  ;;  %760 = vrcp.f32 %v384_v4 }
 0x177   : > { %v749_v33 = vpop.eup %748  ;;  %493 = vst [vmem:[%s1279_s17 + $0x20] sm:$0xff] %v461_v27  ;;  %762 = vrcp.f32 %v386_v5 }
 0x178   : > { %v751_v38 = vpop.eup %750  ;;  %v462_v34 = vmul.f32 %v749_v33, %v1175_v49 }
 0x179   : > { %v463_v36 = vmul.f32 %v751_v38, %v1181_v54  ;;  %v388_v18 = vpop.xlane.xlu1 %387  ;;  %v390_v19 = vpop.xlane.xlu0 %389 }
 0x17a   : > { %494 = vst [vmem:[%s1279_s17 + $0x28] sm:$0xff] %v462_v34  ;;  %764 = vrcp.f32 %v388_v18 }
 0x17b   : > { %v753_v41 = vpop.eup %752  ;;  %495 = vst [vmem:[%s1279_s17 + $0x30] sm:$0xff] %v463_v36  ;;  %766 = vrcp.f32 %v390_v19 }
 0x17c   : > { %v755_v46 = vpop.eup %754  ;;  %v464_v28 = vmul.f32 %v753_v41, %v1183_v57 }
 0x17d   : > { %v465_v29 = vmul.f32 %v755_v46, %v1189_v62  ;;  %v392_v9 = vpop.xlane.xlu1 %391  ;;  %v394_v37 = vpop.xlane.xlu0 %393 }
 0x17e   : > { %496 = vst [vmem:[%s1279_s17 + $0x38] sm:$0xff] %v464_v28  ;;  %768 = vrcp.f32 %v392_v9 }
 0x17f   : > { %v757_v49 = vpop.eup %756  ;;  %497 = vst [vmem:[%s1279_s17 + $0x40] sm:$0xff] %v465_v29  ;;  %770 = vrcp.f32 %v394_v37 }
 0x180   : > { %v759_v54 = vpop.eup %758  ;;  %v466_v44 = vmul.f32 %v757_v49, %v1191_v1 }
 0x181   : > { %v467_v10 = vmul.f32 %v759_v54, %v1197_v6  ;;  %v396_v12 = vpop.xlane.xlu1 %395  ;;  %v398_v13 = vpop.xlane.xlu0 %397 }
 0x182   : > { %498 = vst [vmem:[%s1279_s17 + $0x48] sm:$0xff] %v466_v44  ;;  %772 = vrcp.f32 %v396_v12 }
 0x183   : > { %v761_v57 = vpop.eup %760  ;;  %499 = vst [vmem:[%s1279_s17 + $0x50] sm:$0xff] %v467_v10  ;;  %774 = vrcp.f32 %v398_v13 }
 0x184   : > { %v763_v62 = vpop.eup %762  ;;  %v468_v22 = vmul.f32 %v761_v57, %v1199_v35 }
 0x185   : > { %v469_v23 = vmul.f32 %v763_v62, %v1205_v39  ;;  %v400_v52 = vpop.xlane.xlu1 %399  ;;  %v402_v53 = vpop.xlane.xlu0 %401 }
 0x186   : > { %500 = vst [vmem:[%s1279_s17 + $0x58] sm:$0xff] %v468_v22  ;;  %776 = vrcp.f32 %v400_v52 }
 0x187   : > { %v765_v1 = vpop.eup %764  ;;  %501 = vst [vmem:[%s1279_s17 + $0x60] sm:$0xff] %v469_v23  ;;  %778 = vrcp.f32 %v402_v53 }
 0x188   : > { %v767_v6 = vpop.eup %766  ;;  %v470_v56 = vmul.f32 %v765_v1, %v1207_v43 }
 0x189   : > { %v471_v58 = vmul.f32 %v767_v6, %v1213_v47  ;;  %v404_v14 = vpop.xlane.xlu1 %403  ;;  %v406_v15 = vpop.xlane.xlu0 %405 }
 0x18a   : > { %502 = vst [vmem:[%s1279_s17 + $0x68] sm:$0xff] %v470_v56  ;;  %780 = vrcp.f32 %v404_v14 }
 0x18b   : > { %v769_v35 = vpop.eup %768  ;;  %503 = vst [vmem:[%s1279_s17 + $0x70] sm:$0xff] %v471_v58  ;;  %782 = vrcp.f32 %v406_v15 }
 0x18c   : > { %v771_v39 = vpop.eup %770  ;;  %v472_v24 = vmul.f32 %v769_v35, %v1215_v51 }
 0x18d   : > { %v473_v25 = vmul.f32 %v771_v39, %v1221_v55  ;;  %v408_v60 = vpop.xlane.xlu1 %407  ;;  %v410_v61 = vpop.xlane.xlu0 %409 }
 0x18e   : > { %504 = vst [vmem:[%s1279_s17 + $0x78] sm:$0xff] %v472_v24  ;;  %784 = vrcp.f32 %v408_v60 }
 0x18f   : > { %v773_v43 = vpop.eup %772  ;;  %505 = vst [vmem:[%s1279_s17 + $0x80] sm:$0xff] %v473_v25  ;;  %786 = vrcp.f32 %v410_v61 }
 0x190   : > { %v775_v47 = vpop.eup %774  ;;  %v474_v0 = vmul.f32 %v773_v43, %v1223_v59 }
 0x191   : > { %v475_v32 = vmul.f32 %v775_v47, %v1229_v63  ;;  %v412_v2 = vpop.xlane.xlu1 %411  ;;  %v414_v16 = vpop.xlane.xlu0 %413 }
 0x192   : > { %506 = vst [vmem:[%s1279_s17 + $0x88] sm:$0xff] %v474_v0  ;;  %788 = vrcp.f32 %v412_v2 }
 0x193   : > { %v777_v51 = vpop.eup %776  ;;  %507 = vst [vmem:[%s1279_s17 + $0x90] sm:$0xff] %v475_v32  ;;  %790 = vrcp.f32 %v414_v16 }
 0x194   : > { %v779_v55 = vpop.eup %778  ;;  %v476_v17 = vmul.f32 %v777_v51, %v1231_v3 }
 0x195   : > { %v477_v26 = vmul.f32 %v779_v55, %v1237_v7  ;;  %v416_v27 = vpop.xlane.xlu1 %415  ;;  %v418_v4 = vpop.xlane.xlu0 %417 }
 0x196   : > { %508 = vst [vmem:[%s1279_s17 + $0x98] sm:$0xff] %v476_v17  ;;  %792 = vrcp.f32 %v416_v27 }
 0x197   : > { %v781_v59 = vpop.eup %780  ;;  %509 = vst [vmem:[%s1279_s17 + $0xa0] sm:$0xff] %v477_v26  ;;  %794 = vrcp.f32 %v418_v4 }
 0x198   : > { %v783_v63 = vpop.eup %782  ;;  %v478_v5 = vmul.f32 %v781_v59, %v1239_v8 }
 0x199   : > { %v479_v33 = vmul.f32 %v783_v63, %v1245_v40  ;;  %v420_v38 = vpop.xlane.xlu1 %419  ;;  %v422_v34 = vpop.xlane.xlu0 %421 }
 0x19a   : > { %510 = vst [vmem:[%s1279_s17 + $0xa8] sm:$0xff] %v478_v5  ;;  %796 = vrcp.f32 %v420_v38 }
 0x19b   : > { %v785_v3 = vpop.eup %784  ;;  %511 = vst [vmem:[%s1279_s17 + $0xb0] sm:$0xff] %v479_v33  ;;  %798 = vrcp.f32 %v422_v34 }
 0x19c   : > { %v787_v7 = vpop.eup %786  ;;  %v480_v36 = vmul.f32 %v785_v3, %v1247_v42 }
 0x19d   : > { %v481_v18 = vmul.f32 %v787_v7, %v1251_v30  ;;  %v424_v19 = vpop.xlane.xlu1 %423 }
 0x19e   : > { %512 = vst [vmem:[%s1279_s17 + $0xb8] sm:$0xff] %v480_v36  ;;  %800 = vrcp.f32 %v424_v19 }
 0x19f   : > { %v789_v8 = vpop.eup %788  ;;  %513 = vst [vmem:[%s1279_s17 + $0xc0] sm:$0xff] %v481_v18 }
 0x1a0   : > { %v791_v40 = vpop.eup %790  ;;  %v482_v41 = vmul.f32 %v789_v8, %v1253_v20 }
 0x1a1   : > { %v483_v46 = vmul.f32 %v791_v40, %v1257_v31 }
 0x1a2   : > { %514 = vst [vmem:[%s1279_s17 + $0xc8] sm:$0xff] %v482_v41 }
 0x1a3   : > { %v793_v42 = vpop.eup %792  ;;  %515 = vst [vmem:[%s1279_s17 + $0xd0] sm:$0xff] %v483_v46 }
 0x1a4   : > { %v795_v28 = vpop.eup %794  ;;  %v484_v30 = vmul.f32 %v793_v42, %v1259_v21 }
 0x1a5   : > { %v485_v29 = vmul.f32 %v795_v28, %v1263_v11 }
 0x1a6   : > { %516 = vst [vmem:[%s1279_s17 + $0xd8] sm:$0xff] %v484_v30 }
 0x1a7   : > { %v797_v9 = vpop.eup %796  ;;  %517 = vst [vmem:[%s1279_s17 + $0xe0] sm:$0xff] %v485_v29 }
 0x1a8   : > { %v799_v37 = vpop.eup %798  ;;  %v486_v20 = vmul.f32 %v797_v9, %v1267_v45 }
 0x1a9   : > { %v487_v31 = vmul.f32 %v799_v37, %v1269_v48 }
 0x1aa   : > { %518 = vst [vmem:[%s1279_s17 + $0xe8] sm:$0xff] %v486_v20 }
 0x1ab   : > { %v801_v49 = vpop.eup %800  ;;  %519 = vst [vmem:[%s1279_s17 + $0xf0] sm:$0xff] %v487_v31 }
 0x1ac   : > { %v488_v21 = vmul.f32 %v801_v49, %v1273_v50 }
 0x1ae   : > { %520 = vst [vmem:[%s1279_s17 + $0xf8] sm:$0xff] %v488_v21 }
 0x1af   : > { %843 = shalt.err (!%p840_p9)
}
 0x1b0   : > { %s844_s13 = scalar_lea.hbm %s1347_s2, 4096  ;;  %s848_s20 = scalar_lea.hbm %s1394_s1, 16384 }
 0x1b1   : > { %p845_p13 = scmp.ne.s32.totalorder %s1347_s2, %s844_s13  ;;  %p849_p2 = scmp.lt.s32.totalorder %s1347_s2, %s1394_s1 }
 0x1b2   : > { %p850_p3 = scmp.lt.s32.totalorder %s848_s20, %s844_s13 }
 0x1b3   : > { %p846_p1 = pnand %p845_p13, %p1403_p11 }
 0x1b4   : > { %p851_p6 = por %p850_p3, %p849_p2 }
 0x1b5   : > { %p847_p0 = pneg %p846_p1 }
 0x1b7   : > { %p852_p10 = pnand %p851_p6, %p847_p0 }
 0x1b9   : > { %855 = shalt.err (!%p852_p10)
}
 0x1ba   : > { %s900_s24 = smov 128   ;;  %s901_s26 = smov 8  }
 0x1bb   : > { %626 = dma.vmem_to_hbm [thread:$0]  (%p1403_p11), %s1349_s27, 4096, %s1347_s2, %s522_s10, %s900_s24, %s900_s24, %s901_s26  }
 0x1bc PF: > { %p637_p12 = scmp.ge.s32.totalorder %s894_s9, 2  ;;  %s550_s30 = sand.u32 1, %s882_s6  }
 0x1bd   : > { %p1404_p4 = scmp.ne.s32.totalorder %s1400_s19, 0  ;;  %s551_s17 = scalar_lea.sflag [#allocation4], %s550_s30 }
 0x1bf   : > { %p633_p5 = pnand %p637_p12, %p1404_p4 }
 0x1c1   : > { %p634_p7 = pneg %p633_p5 }
 0x1c3   : > { %877 = dma.done.wait (%p634_p7), %s551_s17, 4096  }
 0x1c4   : > { %879 = vsyncadd (%p634_p7), %s551_s17, 4294963200  ;;  %p14_p8 = scmp.ge.s32.totalorder %s937_s12, 6   ;;  %s1405_s6 = smov %s886_s7 }
 0x1c5   : > { %s1406_s7 = smov %s890_s8  ;;  %s1407_s8 = smov %s949_s15 }
 0x1c6   : > { %s1408_s9 = smov %s937_s12  ;;  %16 = sbr.rel (!%p14_p8) target bundleno = 5 (0x5), region = 69 }
 0x1cb   :  { %556 = vsyncpa [#allocation3], 1 }
 0x1cc   :  { %558 = vsyncpa [#allocation3 + $0x1], 1 }
 0x1cd   :  { %559 = vsyncpa [#allocation4], 1 }
 0x1ce   :  { %561 = vsyncpa [#allocation4 + $0x1], 1 }

</bundles_post_ra>
